<compile_context>
chip_gen: v7x
topology: tpu7x:2x2x1
jax: 0.10.0
libtpu: 0.0.40
codegen_flags: <defaults>
</compile_context>

<pallas_src>
import functools

import jax
import jax.numpy as jnp
from jax import lax
from jax.experimental import pallas as pl
from jax.experimental.pallas import tpu as pltpu

_LANE = 128
_TARGET_BLOCK_BYTES = 6 * 1024 * 1024   # logits+labels block target per grid step
_SENTINEL = -1e4                        # contributes exactly 0 to every stat
_CHUNK = 32                             # sublane rows per inner compute chunk


def _stat_terms(x, match, need_ce, need_dice):
    """Per-element stat contributions for one class.

    x: f32 logits, match: bool one-hot for this class.
    Stat order: [bce] (if need_ce) + [p*y, p, y] (if need_dice).
    """
    terms = []
    e = jnp.exp(-jnp.abs(x))            # the only mandatory EUP transcendental
    one_plus_e = 1.0 + e                # shared by CE (log) and dice (recip)
    if need_ce:
        # stable BCE-with-logits; min(.,100) == torch's log clamp at -100.
        sp_neg = jnp.maximum(-x, 0.0) + jnp.log(one_plus_e)
        terms.append(jnp.minimum(sp_neg + jnp.where(match, 0.0, x), 100.0))
    if need_dice:
        # sigmoid(x) rebuilt from e: no extra exp, approx vrcp is ~free on EUP.
        p = jnp.where(x >= 0.0, 1.0, e) * pl.reciprocal(one_plus_e, approx=True)
        terms.append(jnp.where(match, p, 0.0))
        terms.append(p)
        terms.append(match.astype(jnp.float32))
    return terms


def _fold8(v):
    """(R,128) with R % 8 == 0 -> (8,128): pure elementwise vreg adds."""
    out = v[0:8, :]
    for s in range(8, v.shape[0], 8):
        out = out + v[s:s + 8, :]
    return out


def _accum_block(logit_ref, label_ref, acc_ref, *, num_classes, n_stats,
                 valid_rows, need_ce, need_dice):
    """Accumulate one (C, sub, 128) block into the (n_stats, C, 8, 128) acc."""
    C = num_classes

    def read_label(off, rows):
        return label_ref[pl.ds(off, rows), :].astype(jnp.int32)

    def read_logit(c, off, rows):
        return logit_ref[c, pl.ds(off, rows), :].astype(jnp.float32)

    off = 0
    if valid_rows >= 8:
        zero = jnp.zeros((8, _LANE), jnp.float32)
        partial = [zero] * (C * n_stats)          # register-resident partials

        n_big = valid_rows // _CHUNK
        if n_big > 0:
            def body(r, carry):
                o = pl.multiple_of(r * _CHUNK, _CHUNK)
                lbl = read_label(o, _CHUNK)       # label read once per chunk
                new = list(carry)
                i = 0
                for c in range(C):
                    terms = _stat_terms(read_logit(c, o, _CHUNK),
                                        lbl == (c + 1), need_ce, need_dice)
                    for t in terms:
                        new[i] = new[i] + _fold8(t)
                        i += 1
                return tuple(new)

            partial = list(lax.fori_loop(0, n_big, body, tuple(partial)))

        off = n_big * _CHUNK
        while off + 8 <= valid_rows:              # static leftover 8-row chunks
            lbl = read_label(off, 8)
            i = 0
            for c in range(C):
                terms = _stat_terms(read_logit(c, off, 8),
                                    lbl == (c + 1), need_ce, need_dice)
                for t in terms:
                    partial[i] = partial[i] + t
                    i += 1
            off += 8

        # One small (8,128) read-modify-write per class/stat per grid step.
        i = 0
        for c in range(C):
            for s in range(n_stats):
                acc_ref[s, c, :, :] += partial[i]
                i += 1

    rem = valid_rows - off
    if rem > 0:                                   # ragged (<8 row) tail
        lbl = read_label(off, rem)
        for c in range(C):
            terms = _stat_terms(read_logit(c, off, rem),
                                lbl == (c + 1), need_ce, need_dice)
            for s, t in enumerate(terms):
                acc_ref[s, c, 0:rem, :] += t


def _stats_kernel(logit_ref, label_ref, out_ref, acc_ref, *,
                  num_classes, n_stats, sub, s_total, k_total,
                  need_ce, need_dice):
    """Per-sample per-class stats.  out columns: [sum BCE, sum p*y, sum p, sum y]."""
    C = num_classes
    k = pl.program_id(2)
    last_k = pl.num_programs(2) - 1

    @pl.when(k == 0)
    def _():
        acc_ref[...] = jnp.zeros_like(acc_ref)

    accum = functools.partial(
        _accum_block, logit_ref, label_ref, acc_ref,
        num_classes=C, n_stats=n_stats, need_ce=need_ce, need_dice=need_dice)

    tail_rows = s_total - (k_total - 1) * sub
    if tail_rows == sub:
        accum(valid_rows=sub)                     # sub divides S: never masked
    else:
        # Only the last *global* step is ragged; unmasked fast path otherwise.
        is_tail = jnp.logical_and(
            pl.program_id(0) == pl.num_programs(0) - 1, k == last_k)

        @pl.when(jnp.logical_not(is_tail))
        def _():
            accum(valid_rows=sub)

        @pl.when(is_tail)
        def _():
            accum(valid_rows=tail_rows)

    @pl.when(k == last_k)
    def _():
        zeros = jnp.zeros((C, 1), jnp.float32)

        def colsum(a):                            # (C, 8, 128) -> (C, 1)
            t = jnp.sum(a, axis=2)
            return jnp.sum(t, axis=1, keepdims=True)

        si = 0
        if need_ce:
            out_ref[:, 0:1] = colsum(acc_ref[si])
            si += 1
        else:
            out_ref[:, 0:1] = zeros
        if need_dice:
            out_ref[:, 1:2] = colsum(acc_ref[si])
            out_ref[:, 2:3] = colsum(acc_ref[si + 1])
            out_ref[:, 3:4] = colsum(acc_ref[si + 2])
        else:
            out_ref[:, 1:2] = zeros
            out_ref[:, 2:3] = zeros
            out_ref[:, 3:4] = zeros


def _choose_sub_tile(num_classes, s_total, logit_itemsize, target_bytes):
    """Pick the S-tile (sublane rows): dtype-aware, multiple of 32, prefer a divisor."""
    bytes_per_row = num_classes * _LANE * logit_itemsize
    target_rows = max(32, target_bytes // bytes_per_row)
    if s_total <= target_rows:
        return s_total                            # single full block (always legal)
    t = (target_rows // 32) * 32
    best = 0
    for cand in range(t, 31, -32):                # largest mult-of-32 divisor <= t
        if s_total % cand == 0:
            best = cand
            break
    if best * 2 >= t:                             # good divisor -> no masking ever
        return best
    return t                                      # last global step gets masked


def _per_class_stats(cls_score, label, need_ce, need_dice, *,
                     target_block_bytes=_TARGET_BLOCK_BYTES):
    """cls_score [N,C,H,W] (native dtype), label [N,H,W] int -> [N,C,4] f32."""
    N, C, H, W = cls_score.shape
    HW = H * W

    # Keep labels in their narrow integer dtype (no int32 HBM round trip).
    if (not jnp.issubdtype(label.dtype, jnp.integer)) or label.dtype.itemsize > 4:
        label = label.astype(jnp.int32)

    logits = cls_score.reshape(N, C, HW)
    labels = label.reshape(N, HW)

    if HW % _LANE != 0:
        # Rare fallback: sentinel-padded lanes contribute exactly 0 everywhere.
        pad = _LANE - (HW % _LANE)
        logits = jnp.pad(logits, ((0, 0), (0, 0), (0, pad)),
                         constant_values=_SENTINEL)
        labels = jnp.pad(labels, ((0, 0), (0, pad)), constant_values=0)

    s_total = logits.shape[-1] // _LANE
    logits = logits.reshape(N, C, s_total, _LANE)     # free reshapes
    labels = labels.reshape(N, s_total, _LANE)

    itemsize = jnp.dtype(cls_score.dtype).itemsize
    lbl_itemsize = jnp.dtype(labels.dtype).itemsize
    sub = _choose_sub_tile(C, s_total, itemsize, target_block_bytes)
    k_steps = pl.cdiv(s_total, sub)

    # Spatial core-split when there is no batch parallelism (v7x: 2 TCs).
    num_splits = 2 if (N == 1 and k_steps >= 2 and k_steps % 2 == 0) else 1
    kps = k_steps // num_splits

    n_stats = (1 if need_ce else 0) + (3 if need_dice else 0)

    kernel = functools.partial(
        _stats_kernel, num_classes=C, n_stats=n_stats, sub=sub,
        s_total=s_total, k_total=k_steps, need_ce=need_ce, need_dice=need_dice)

    # VMEM budget from the actual block sizes (double-buffered inputs + scratch).
    block_bytes = C * sub * _LANE * itemsize + sub * _LANE * lbl_itemsize
    vmem_bytes = 2 * block_bytes + n_stats * C * 8 * _LANE * 4
    vmem_limit = int(min(max(vmem_bytes * 3 // 2 + (4 << 20), 16 << 20), 40 << 20))

    stats = pl.pallas_call(
        kernel,
        out_shape=jax.ShapeDtypeStruct((num_splits, N, C, 4), jnp.float32),
        grid_spec=pltpu.PrefetchScalarGridSpec(
            num_scalar_prefetch=0,
            grid=(num_splits, N, kps),
            in_specs=[
                pl.BlockSpec((None, C, sub, _LANE),
                             lambda s, n, k: (n, 0, s * kps + k, 0)),
                pl.BlockSpec((None, sub, _LANE),
                             lambda s, n, k: (n, s * kps + k, 0)),
            ],
            out_specs=pl.BlockSpec((None, None, C, 4),
                                   lambda s, n, k: (s, n, 0, 0)),
            scratch_shapes=[pltpu.VMEM((n_stats, C, 8, _LANE), jnp.float32)],
        ),
        compiler_params=pltpu.CompilerParams(
            dimension_semantics=("parallel", "parallel", "arbitrary"),
            vmem_limit_bytes=vmem_limit),
    )(logits, labels)

    return jnp.sum(stats, axis=0)                 # combine core-split partials


class BinaryLoss:
    """JAX/Pallas port of mmseg BinaryLoss ('ce', 'dice', 'ce_dice', 'mix')."""

    def __init__(self, loss_type='ce', reduction='mean', class_weight=None,
                 class_weight_norm=False, loss_weight=1.0, smooth=1.0,
                 loss_name='loss_ce', **kwargs):
        assert loss_type in ['ce', 'dice', 'cbce', 'ce_dice', 'mix']
        self.loss_type = loss_type
        self.reduction = reduction
        self.class_weight = class_weight
        self.class_weight_norm = class_weight_norm
        self.loss_weight = loss_weight
        self.smooth = smooth
        self.loss_name_ = loss_name
        self._target_block_bytes = int(kwargs.get('target_block_bytes',
                                                  _TARGET_BLOCK_BYTES))

    def __call__(self, cls_score, label, weight=None, avg_factor=None,
                 reduction_override=None, **kwargs):
        assert reduction_override in (None, 'none', 'mean', 'sum')
        reduction = reduction_override if reduction_override else self.reduction

        if self.loss_type == 'cbce':
            # TODO(synk): 'cbce' (per-pixel class-balanced weights) not ported.
            raise NotImplementedError("loss_type 'cbce' not implemented")
        if label.ndim == cls_score.ndim:
            # TODO(synk): pre-one-hot / soft label inputs not ported.
            raise NotImplementedError("label with pred's shape not supported")

        N, C, H, W = cls_score.shape
        HW = H * W
        need_ce = self.loss_type in ('ce', 'ce_dice', 'mix')
        need_dice = self.loss_type in ('dice', 'ce_dice', 'mix')

        stats = _per_class_stats(cls_score, label, need_ce, need_dice,
                                 target_block_bytes=self._target_block_bytes)
        bce_mean = stats[..., 0] / HW                                   # [N, C]
        dice = 1.0 - (2.0 * stats[..., 1] + self.smooth) / (
            stats[..., 2] + stats[..., 3] + self.smooth)                # [N, C]

        if self.loss_type == 'ce':
            per_class = bce_mean
        elif self.loss_type == 'dice':
            per_class = dice
        elif self.loss_type == 'ce_dice':
            per_class = bce_mean + dice
        else:  # 'mix'
            assert C == 4
            per_class = jnp.concatenate([bce_mean[:, :3], dice[:, 3:4]], axis=1)

        if self.class_weight is not None:
            cw = jnp.asarray(self.class_weight, jnp.float32)
            loss = jnp.sum(per_class * cw[None, :], axis=1)
            loss = loss / (jnp.sum(cw) if self.class_weight_norm else C)
        else:
            loss = jnp.sum(per_class, axis=1) / C                        # [N]

        # weight_reduce_loss
        if weight is not None:
            loss = loss * weight
        if reduction == 'mean':
            loss = jnp.mean(loss) if avg_factor is None else jnp.sum(loss) / avg_factor
        elif reduction == 'sum':
            loss = jnp.sum(loss)
        return self.loss_weight * loss

    @property
    def loss_name(self):
        return self.loss_name_


def _reference_loss(cls_score, label, loss_type='ce', smooth=1.0):
    """Pure-JAX reference (reduction='mean') for sanity checking."""
    N, C, H, W = cls_score.shape
    onehot = jax.nn.one_hot(label.astype(jnp.int32) - 1, C, axis=1,
                            dtype=jnp.float32)
    p = jax.nn.sigmoid(cls_score.astype(jnp.float32))
    log_p = jnp.maximum(jnp.log(p), -100.0)
    log_1mp = jnp.maximum(jnp.log(1.0 - p), -100.0)
    bce = -(onehot * log_p + (1.0 - onehot) * log_1mp)
    ce_pc = jnp.mean(bce, axis=(2, 3))                                   # [N, C]
    pf = p.reshape(N, C, -1)
    yf = onehot.reshape(N, C, -1)
    dice_pc = 1.0 - (2.0 * jnp.sum(pf * yf, -1) + smooth) / (
        jnp.sum(pf, -1) + jnp.sum(yf, -1) + smooth)
    if loss_type == 'ce':
        per_class = ce_pc
    elif loss_type == 'dice':
        per_class = dice_pc
    elif loss_type == 'mix':
        per_class = jnp.concatenate([ce_pc[:, :3], dice_pc[:, 3:4]], axis=1)
    else:
        per_class = ce_pc + dice_pc
    loss = jnp.sum(per_class, axis=1) / C
    return jnp.mean(loss)


if __name__ == "__main__":
    key = jax.random.PRNGKey(0)
    ks = jax.random.split(key, 8)

    # 1) Small: N=2, C=4, 16x16 (single tiny spatial tile, ragged <8-row path).
    N, C, H, W = 2, 4, 16, 16
    cls_score = jax.random.normal(ks[0], (N, C, H, W), dtype=jnp.float32)
    label = jax.random.randint(ks[1], (N, H, W), 0, C + 1, dtype=jnp.int32)
    for lt in ('ce', 'dice', 'ce_dice', 'mix'):
        mod = BinaryLoss(loss_type=lt, reduction='mean', loss_weight=1.0, smooth=1.0)
        out = jax.block_until_ready(mod(cls_score, label))
        ref = jax.block_until_ready(_reference_loss(cls_score, label, loss_type=lt))
        assert jnp.allclose(out, ref, rtol=1e-3, atol=1e-5), (lt, out, ref)

    # 2) Ragged HW (10x10, HW % 128 != 0) and C != 4 -> sentinel pad fallback.
    cls2 = jax.random.normal(ks[2], (2, 3, 10, 10), dtype=jnp.float32)
    lab2 = jax.random.randint(ks[3], (2, 10, 10), 0, 4, dtype=jnp.int32)
    mod2 = BinaryLoss(loss_type='ce_dice', reduction='mean')
    out2 = jax.block_until_ready(mod2(cls2, lab2))
    ref2 = jax.block_until_ready(_reference_loss(cls2, lab2, loss_type='ce_dice'))
    assert jnp.allclose(out2, ref2, rtol=1e-3, atol=1e-5), (out2, ref2)

    # 3) Large: 1x4x768x768, uint8 labels -> multi-step grid + core-split + narrow labels.
    cls3 = jax.random.normal(ks[4], (1, 4, 768, 768), dtype=jnp.float32)
    lab3 = jax.random.randint(ks[5], (1, 768, 768), 0, 5, dtype=jnp.int32).astype(jnp.uint8)
    mod3 = BinaryLoss(loss_type='ce', reduction='mean')
    out3 = jax.block_until_ready(mod3(cls3, lab3))
    ref3 = jax.block_until_ready(_reference_loss(cls3, lab3, loss_type='ce'))
    assert jnp.allclose(out3, ref3, rtol=1e-3, atol=1e-5), (out3, ref3)

    # 4) Forced small block target -> multi-step + masked last-step tail path.
    cls4 = jax.random.normal(ks[6], (1, 4, 112, 80), dtype=jnp.float32)
    lab4 = jax.random.randint(ks[7], (1, 112, 80), 0, 5, dtype=jnp.int32)
    mod4 = BinaryLoss(loss_type='ce_dice', reduction='mean',
                      target_block_bytes=64 * 1024)
    out4 = jax.block_until_ready(mod4(cls4, lab4))
    ref4 = jax.block_until_ready(_reference_loss(cls4, lab4, loss_type='ce_dice'))
    assert jnp.allclose(out4, ref4, rtol=1e-3, atol=1e-5), (out4, ref4)

    print("KERNEL_OK")
</pallas_src>

<mosaic_0001>
module attributes {stable_mosaic.version = 11 : i64} {
  func.func @_stats_kernel(%arg0: i32, %arg1: i32, %arg2: i32, %arg3: memref<1x4x2x128xf32, #tpu.memory_space<vmem>>, %arg4: memref<1x2x128xi32, #tpu.memory_space<vmem>>, %arg5: memref<1x1x4x4xf32, #tpu.memory_space<vmem>>, %arg6: memref<1x4x8x128xf32, #tpu.memory_space<vmem>>) attributes {dimension_semantics = [#tpu.dimension_semantics<parallel>, #tpu.dimension_semantics<parallel>, #tpu.dimension_semantics<arbitrary>], iteration_bounds = array<i64: 1, 2, 1>, scalar_prefetch = 0 : i64, scratch_operands = 1 : i64, tpu.core_type = #tpu.core_type<tc>, window_params = [{transform_indices = @transform_0, window_bounds = array<i64: 1, 4, 2, 128>}, {transform_indices = @transform_1, window_bounds = array<i64: 1, 2, 128>}, {transform_indices = @transform_2, window_bounds = array<i64: 1, 1, 4, 4>}]} {
    %c0_i32 = arith.constant 0 : i32
    %0 = arith.cmpi eq, %arg2, %c0_i32 : i32
    %1 = arith.extui %0 : i1 to i32
    %c0_i32_0 = arith.constant 0 : i32
    %2 = arith.cmpi ne, %1, %c0_i32_0 : i32
    scf.if %2 {
      %cst_73 = arith.constant 0.000000e+00 : f32
      %116 = vector.broadcast %cst_73 : f32 to vector<1x4x8x128xf32>
      %c0_74 = arith.constant 0 : index
      %c0_75 = arith.constant 0 : index
      %c0_76 = arith.constant 0 : index
      %c0_77 = arith.constant 0 : index
      %117 = vector.load %arg6[%c0_74, %c0_75, %c0_76, %c0_77] : memref<1x4x8x128xf32, #tpu.memory_space<vmem>>, vector<1x4x8x128xf32>
      tpu.vector_store %arg6[%c0_74, %c0_75, %c0_76, %c0_77], %116 {strides = array<i32>} : memref<1x4x8x128xf32, #tpu.memory_space<vmem>>, vector<1x4x8x128xf32>,
    } else {
    }
    %c0 = arith.constant 0 : index
    %c0_1 = arith.constant 0 : index
    %c0_2 = arith.constant 0 : index
    %3 = vector.load %arg4[%c0, %c0_1, %c0_2] : memref<1x2x128xi32, #tpu.memory_space<vmem>>, vector<1x2x128xi32>
    %4 = vector.shape_cast %3 : vector<1x2x128xi32> to vector<2x128xi32>
    %c0_3 = arith.constant 0 : index
    %c0_4 = arith.constant 0 : index
    %c0_5 = arith.constant 0 : index
    %c0_6 = arith.constant 0 : index
    %5 = vector.load %arg3[%c0_3, %c0_4, %c0_5, %c0_6] : memref<1x4x2x128xf32, #tpu.memory_space<vmem>>, vector<1x1x2x128xf32>
    %6 = vector.shape_cast %5 : vector<1x1x2x128xf32> to vector<2x128xf32>
    %c1_i32 = arith.constant 1 : i32
    %7 = vector.broadcast %c1_i32 : i32 to vector<2x128xi32>
    %8 = arith.cmpi eq, %4, %7 : vector<2x128xi32>
    %9 = math.absf %6 : vector<2x128xf32>
    %cst = arith.constant 0.000000e+00 : f32
    %10 = vector.broadcast %cst : f32 to vector<2x128xf32>
    %11 = arith.subf %10, %9 : vector<2x128xf32>
    %12 = math.exp %11 : vector<2x128xf32>
    %cst_7 = arith.constant 1.000000e+00 : f32
    %13 = vector.broadcast %cst_7 : f32 to vector<2x128xf32>
    %14 = arith.addf %13, %12 : vector<2x128xf32>
    %cst_8 = arith.constant 0.000000e+00 : f32
    %15 = vector.broadcast %cst_8 : f32 to vector<2x128xf32>
    %16 = arith.subf %15, %6 : vector<2x128xf32>
    %cst_9 = arith.constant 0.000000e+00 : f32
    %17 = vector.broadcast %cst_9 : f32 to vector<2x128xf32>
    %18 = arith.maximumf %16, %17 : vector<2x128xf32>
    %19 = math.log %14 : vector<2x128xf32>
    %20 = arith.addf %18, %19 : vector<2x128xf32>
    %cst_10 = arith.constant 0.000000e+00 : f32
    %21 = vector.broadcast %cst_10 : f32 to vector<2x128xf32>
    %22 = arith.select %8, %21, %6 : vector<2x128xi1>, vector<2x128xf32>
    %23 = arith.addf %20, %22 : vector<2x128xf32>
    %cst_11 = arith.constant 1.000000e+02 : f32
    %24 = vector.broadcast %cst_11 : f32 to vector<2x128xf32>
    %25 = arith.minimumf %23, %24 : vector<2x128xf32>
    %c0_12 = arith.constant 0 : index
    %c0_13 = arith.constant 0 : index
    %c0_14 = arith.constant 0 : index
    %c0_15 = arith.constant 0 : index
    %26 = vector.load %arg6[%c0_12, %c0_13, %c0_14, %c0_15] : memref<1x4x8x128xf32, #tpu.memory_space<vmem>>, vector<1x1x2x128xf32>
    %27 = vector.shape_cast %26 : vector<1x1x2x128xf32> to vector<2x128xf32>
    %28 = arith.addf %27, %25 : vector<2x128xf32>
    %c0_16 = arith.constant 0 : index
    %c0_17 = arith.constant 0 : index
    %c0_18 = arith.constant 0 : index
    %c0_19 = arith.constant 0 : index
    %29 = vector.load %arg6[%c0_16, %c0_17, %c0_18, %c0_19] : memref<1x4x8x128xf32, #tpu.memory_space<vmem>>, vector<1x1x2x128xf32>
    %30 = vector.shape_cast %29 : vector<1x1x2x128xf32> to vector<2x128xf32>
    %31 = vector.shape_cast %28 : vector<2x128xf32> to vector<1x1x2x128xf32>
    tpu.vector_store %arg6[%c0_16, %c0_17, %c0_18, %c0_19], %31 {strides = array<i32>} : memref<1x4x8x128xf32, #tpu.memory_space<vmem>>, vector<1x1x2x128xf32>,
    %c0_20 = arith.constant 0 : index
    %c1 = arith.constant 1 : index
    %c0_21 = arith.constant 0 : index
    %c0_22 = arith.constant 0 : index
    %32 = vector.load %arg3[%c0_20, %c1, %c0_21, %c0_22] : memref<1x4x2x128xf32, #tpu.memory_space<vmem>>, vector<1x1x2x128xf32>
    %33 = vector.shape_cast %32 : vector<1x1x2x128xf32> to vector<2x128xf32>
    %c2_i32 = arith.constant 2 : i32
    %34 = vector.broadcast %c2_i32 : i32 to vector<2x128xi32>
    %35 = arith.cmpi eq, %4, %34 : vector<2x128xi32>
    %36 = math.absf %33 : vector<2x128xf32>
    %cst_23 = arith.constant 0.000000e+00 : f32
    %37 = vector.broadcast %cst_23 : f32 to vector<2x128xf32>
    %38 = arith.subf %37, %36 : vector<2x128xf32>
    %39 = math.exp %38 : vector<2x128xf32>
    %cst_24 = arith.constant 1.000000e+00 : f32
    %40 = vector.broadcast %cst_24 : f32 to vector<2x128xf32>
    %41 = arith.addf %40, %39 : vector<2x128xf32>
    %cst_25 = arith.constant 0.000000e+00 : f32
    %42 = vector.broadcast %cst_25 : f32 to vector<2x128xf32>
    %43 = arith.subf %42, %33 : vector<2x128xf32>
    %cst_26 = arith.constant 0.000000e+00 : f32
    %44 = vector.broadcast %cst_26 : f32 to vector<2x128xf32>
    %45 = arith.maximumf %43, %44 : vector<2x128xf32>
    %46 = math.log %41 : vector<2x128xf32>
    %47 = arith.addf %45, %46 : vector<2x128xf32>
    %cst_27 = arith.constant 0.000000e+00 : f32
    %48 = vector.broadcast %cst_27 : f32 to vector<2x128xf32>
    %49 = arith.select %35, %48, %33 : vector<2x128xi1>, vector<2x128xf32>
    %50 = arith.addf %47, %49 : vector<2x128xf32>
    %cst_28 = arith.constant 1.000000e+02 : f32
    %51 = vector.broadcast %cst_28 : f32 to vector<2x128xf32>
    %52 = arith.minimumf %50, %51 : vector<2x128xf32>
    %c0_29 = arith.constant 0 : index
    %c1_30 = arith.constant 1 : index
    %c0_31 = arith.constant 0 : index
    %c0_32 = arith.constant 0 : index
    %53 = vector.load %arg6[%c0_29, %c1_30, %c0_31, %c0_32] : memref<1x4x8x128xf32, #tpu.memory_space<vmem>>, vector<1x1x2x128xf32>
    %54 = vector.shape_cast %53 : vector<1x1x2x128xf32> to vector<2x128xf32>
    %55 = arith.addf %54, %52 : vector<2x128xf32>
    %c0_33 = arith.constant 0 : index
    %c1_34 = arith.constant 1 : index
    %c0_35 = arith.constant 0 : index
    %c0_36 = arith.constant 0 : index
    %56 = vector.load %arg6[%c0_33, %c1_34, %c0_35, %c0_36] : memref<1x4x8x128xf32, #tpu.memory_space<vmem>>, vector<1x1x2x128xf32>
    %57 = vector.shape_cast %56 : vector<1x1x2x128xf32> to vector<2x128xf32>
    %58 = vector.shape_cast %55 : vector<2x128xf32> to vector<1x1x2x128xf32>
    tpu.vector_store %arg6[%c0_33, %c1_34, %c0_35, %c0_36], %58 {strides = array<i32>} : memref<1x4x8x128xf32, #tpu.memory_space<vmem>>, vector<1x1x2x128xf32>,
    %c0_37 = arith.constant 0 : index
    %c2 = arith.constant 2 : index
    %c0_38 = arith.constant 0 : index
    %c0_39 = arith.constant 0 : index
    %59 = vector.load %arg3[%c0_37, %c2, %c0_38, %c0_39] : memref<1x4x2x128xf32, #tpu.memory_space<vmem>>, vector<1x1x2x128xf32>
    %60 = vector.shape_cast %59 : vector<1x1x2x128xf32> to vector<2x128xf32>
    %c3_i32 = arith.constant 3 : i32
    %61 = vector.broadcast %c3_i32 : i32 to vector<2x128xi32>
    %62 = arith.cmpi eq, %4, %61 : vector<2x128xi32>
    %63 = math.absf %60 : vector<2x128xf32>
    %cst_40 = arith.constant 0.000000e+00 : f32
    %64 = vector.broadcast %cst_40 : f32 to vector<2x128xf32>
    %65 = arith.subf %64, %63 : vector<2x128xf32>
    %66 = math.exp %65 : vector<2x128xf32>
    %cst_41 = arith.constant 1.000000e+00 : f32
    %67 = vector.broadcast %cst_41 : f32 to vector<2x128xf32>
    %68 = arith.addf %67, %66 : vector<2x128xf32>
    %cst_42 = arith.constant 0.000000e+00 : f32
    %69 = vector.broadcast %cst_42 : f32 to vector<2x128xf32>
    %70 = arith.subf %69, %60 : vector<2x128xf32>
    %cst_43 = arith.constant 0.000000e+00 : f32
    %71 = vector.broadcast %cst_43 : f32 to vector<2x128xf32>
    %72 = arith.maximumf %70, %71 : vector<2x128xf32>
    %73 = math.log %68 : vector<2x128xf32>
    %74 = arith.addf %72, %73 : vector<2x128xf32>
    %cst_44 = arith.constant 0.000000e+00 : f32
    %75 = vector.broadcast %cst_44 : f32 to vector<2x128xf32>
    %76 = arith.select %62, %75, %60 : vector<2x128xi1>, vector<2x128xf32>
    %77 = arith.addf %74, %76 : vector<2x128xf32>
    %cst_45 = arith.constant 1.000000e+02 : f32
    %78 = vector.broadcast %cst_45 : f32 to vector<2x128xf32>
    %79 = arith.minimumf %77, %78 : vector<2x128xf32>
    %c0_46 = arith.constant 0 : index
    %c2_47 = arith.constant 2 : index
    %c0_48 = arith.constant 0 : index
    %c0_49 = arith.constant 0 : index
    %80 = vector.load %arg6[%c0_46, %c2_47, %c0_48, %c0_49] : memref<1x4x8x128xf32, #tpu.memory_space<vmem>>, vector<1x1x2x128xf32>
    %81 = vector.shape_cast %80 : vector<1x1x2x128xf32> to vector<2x128xf32>
    %82 = arith.addf %81, %79 : vector<2x128xf32>
    %c0_50 = arith.constant 0 : index
    %c2_51 = arith.constant 2 : index
    %c0_52 = arith.constant 0 : index
    %c0_53 = arith.constant 0 : index
    %83 = vector.load %arg6[%c0_50, %c2_51, %c0_52, %c0_53] : memref<1x4x8x128xf32, #tpu.memory_space<vmem>>, vector<1x1x2x128xf32>
    %84 = vector.shape_cast %83 : vector<1x1x2x128xf32> to vector<2x128xf32>
    %85 = vector.shape_cast %82 : vector<2x128xf32> to vector<1x1x2x128xf32>
    tpu.vector_store %arg6[%c0_50, %c2_51, %c0_52, %c0_53], %85 {strides = array<i32>} : memref<1x4x8x128xf32, #tpu.memory_space<vmem>>, vector<1x1x2x128xf32>,
    %c0_54 = arith.constant 0 : index
    %c3 = arith.constant 3 : index
    %c0_55 = arith.constant 0 : index
    %c0_56 = arith.constant 0 : index
    %86 = vector.load %arg3[%c0_54, %c3, %c0_55, %c0_56] : memref<1x4x2x128xf32, #tpu.memory_space<vmem>>, vector<1x1x2x128xf32>
    %87 = vector.shape_cast %86 : vector<1x1x2x128xf32> to vector<2x128xf32>
    %c4_i32 = arith.constant 4 : i32
    %88 = vector.broadcast %c4_i32 : i32 to vector<2x128xi32>
    %89 = arith.cmpi eq, %4, %88 : vector<2x128xi32>
    %90 = math.absf %87 : vector<2x128xf32>
    %cst_57 = arith.constant 0.000000e+00 : f32
    %91 = vector.broadcast %cst_57 : f32 to vector<2x128xf32>
    %92 = arith.subf %91, %90 : vector<2x128xf32>
    %93 = math.exp %92 : vector<2x128xf32>
    %cst_58 = arith.constant 1.000000e+00 : f32
    %94 = vector.broadcast %cst_58 : f32 to vector<2x128xf32>
    %95 = arith.addf %94, %93 : vector<2x128xf32>
    %cst_59 = arith.constant 0.000000e+00 : f32
    %96 = vector.broadcast %cst_59 : f32 to vector<2x128xf32>
    %97 = arith.subf %96, %87 : vector<2x128xf32>
    %cst_60 = arith.constant 0.000000e+00 : f32
    %98 = vector.broadcast %cst_60 : f32 to vector<2x128xf32>
    %99 = arith.maximumf %97, %98 : vector<2x128xf32>
    %100 = math.log %95 : vector<2x128xf32>
    %101 = arith.addf %99, %100 : vector<2x128xf32>
    %cst_61 = arith.constant 0.000000e+00 : f32
    %102 = vector.broadcast %cst_61 : f32 to vector<2x128xf32>
    %103 = arith.select %89, %102, %87 : vector<2x128xi1>, vector<2x128xf32>
    %104 = arith.addf %101, %103 : vector<2x128xf32>
    %cst_62 = arith.constant 1.000000e+02 : f32
    %105 = vector.broadcast %cst_62 : f32 to vector<2x128xf32>
    %106 = arith.minimumf %104, %105 : vector<2x128xf32>
    %c0_63 = arith.constant 0 : index
    %c3_64 = arith.constant 3 : index
    %c0_65 = arith.constant 0 : index
    %c0_66 = arith.constant 0 : index
    %107 = vector.load %arg6[%c0_63, %c3_64, %c0_65, %c0_66] : memref<1x4x8x128xf32, #tpu.memory_space<vmem>>, vector<1x1x2x128xf32>
    %108 = vector.shape_cast %107 : vector<1x1x2x128xf32> to vector<2x128xf32>
    %109 = arith.addf %108, %106 : vector<2x128xf32>
    %c0_67 = arith.constant 0 : index
    %c3_68 = arith.constant 3 : index
    %c0_69 = arith.constant 0 : index
    %c0_70 = arith.constant 0 : index
    %110 = vector.load %arg6[%c0_67, %c3_68, %c0_69, %c0_70] : memref<1x4x8x128xf32, #tpu.memory_space<vmem>>, vector<1x1x2x128xf32>
    %111 = vector.shape_cast %110 : vector<1x1x2x128xf32> to vector<2x128xf32>
    %112 = vector.shape_cast %109 : vector<2x128xf32> to vector<1x1x2x128xf32>
    tpu.vector_store %arg6[%c0_67, %c3_68, %c0_69, %c0_70], %112 {strides = array<i32>} : memref<1x4x8x128xf32, #tpu.memory_space<vmem>>, vector<1x1x2x128xf32>,
    %c0_i32_71 = arith.constant 0 : i32
    %113 = arith.cmpi eq, %arg2, %c0_i32_71 : i32
    %114 = arith.extui %113 : i1 to i32
    %c0_i32_72 = arith.constant 0 : i32
    %115 = arith.cmpi ne, %114, %c0_i32_72 : i32
    scf.if %115 {
      %cst_73 = arith.constant 0.000000e+00 : f32
      %116 = vector.broadcast %cst_73 : f32 to vector<4x1xf32>
      %c0_74 = arith.constant 0 : index
      %c0_75 = arith.constant 0 : index
      %c0_76 = arith.constant 0 : index
      %c0_77 = arith.constant 0 : index
      %117 = vector.load %arg6[%c0_74, %c0_75, %c0_76, %c0_77] : memref<1x4x8x128xf32, #tpu.memory_space<vmem>>, vector<1x4x8x128xf32>
      %118 = vector.shape_cast %117 : vector<1x4x8x128xf32> to vector<4x8x128xf32>
      %cst_78 = arith.constant dense<0.000000e+00> : vector<4x8xf32>
      %119 = vector.multi_reduction <add>, %118, %cst_78 [2] : vector<4x8x128xf32> to vector<4x8xf32>
      %cst_79 = arith.constant dense<0.000000e+00> : vector<4xf32>
      %120 = vector.multi_reduction <add>, %119, %cst_79 [1] : vector<4x8xf32> to vector<4xf32>
      %121 = vector.shape_cast %120 : vector<4xf32> to vector<4x1xf32>
      %c0_80 = arith.constant 0 : index
      %c0_81 = arith.constant 0 : index
      %c0_82 = arith.constant 0 : index
      %c0_83 = arith.constant 0 : index
      %122 = vector.load %arg5[%c0_80, %c0_81, %c0_82, %c0_83] : memref<1x1x4x4xf32, #tpu.memory_space<vmem>>, vector<1x1x4x1xf32>
      %123 = vector.shape_cast %122 : vector<1x1x4x1xf32> to vector<4x1xf32>
      %124 = vector.shape_cast %121 : vector<4x1xf32> to vector<1x1x4x1xf32>
      tpu.vector_store %arg5[%c0_80, %c0_81, %c0_82, %c0_83], %124 {strides = array<i32>} : memref<1x1x4x4xf32, #tpu.memory_space<vmem>>, vector<1x1x4x1xf32>,
      %c0_84 = arith.constant 0 : index
      %c0_85 = arith.constant 0 : index
      %c0_86 = arith.constant 0 : index
      %c1_87 = arith.constant 1 : index
      %125 = vector.load %arg5[%c0_84, %c0_85, %c0_86, %c1_87] : memref<1x1x4x4xf32, #tpu.memory_space<vmem>>, vector<1x1x4x1xf32>
      %126 = vector.shape_cast %125 : vector<1x1x4x1xf32> to vector<4x1xf32>
      %127 = vector.shape_cast %116 : vector<4x1xf32> to vector<1x1x4x1xf32>
      tpu.vector_store %arg5[%c0_84, %c0_85, %c0_86, %c1_87], %127 {strides = array<i32>} : memref<1x1x4x4xf32, #tpu.memory_space<vmem>>, vector<1x1x4x1xf32>,
      %c0_88 = arith.constant 0 : index
      %c0_89 = arith.constant 0 : index
      %c0_90 = arith.constant 0 : index
      %c2_91 = arith.constant 2 : index
      %128 = vector.load %arg5[%c0_88, %c0_89, %c0_90, %c2_91] : memref<1x1x4x4xf32, #tpu.memory_space<vmem>>, vector<1x1x4x1xf32>
      %129 = vector.shape_cast %128 : vector<1x1x4x1xf32> to vector<4x1xf32>
      %130 = vector.shape_cast %116 : vector<4x1xf32> to vector<1x1x4x1xf32>
      tpu.vector_store %arg5[%c0_88, %c0_89, %c0_90, %c2_91], %130 {strides = array<i32>} : memref<1x1x4x4xf32, #tpu.memory_space<vmem>>, vector<1x1x4x1xf32>,
      %c0_92 = arith.constant 0 : index
      %c0_93 = arith.constant 0 : index
      %c0_94 = arith.constant 0 : index
      %c3_95 = arith.constant 3 : index
      %131 = vector.load %arg5[%c0_92, %c0_93, %c0_94, %c3_95] : memref<1x1x4x4xf32, #tpu.memory_space<vmem>>, vector<1x1x4x1xf32>
      %132 = vector.shape_cast %131 : vector<1x1x4x1xf32> to vector<4x1xf32>
      %133 = vector.shape_cast %116 : vector<4x1xf32> to vector<1x1x4x1xf32>
      tpu.vector_store %arg5[%c0_92, %c0_93, %c0_94, %c3_95], %133 {strides = array<i32>} : memref<1x1x4x4xf32, #tpu.memory_space<vmem>>, vector<1x1x4x1xf32>,
    } else {
    }
    return
  }
  func.func @transform_0(%arg0: i32, %arg1: i32, %arg2: i32) -> (i32, i32, i32, i32) {
    %c1_i32 = arith.constant 1 : i32
    %0 = arith.muli %arg0, %c1_i32 : i32
    %1 = arith.addi %0, %arg2 : i32
    %c0_i32 = arith.constant 0 : i32
    %c0_i32_0 = arith.constant 0 : i32
    %c0_i32_1 = arith.constant 0 : i32
    return %arg1, %c0_i32, %1, %c0_i32_0 : i32, i32, i32, i32
  }
  func.func @transform_1(%arg0: i32, %arg1: i32, %arg2: i32) -> (i32, i32, i32) {
    %c1_i32 = arith.constant 1 : i32
    %0 = arith.muli %arg0, %c1_i32 : i32
    %1 = arith.addi %0, %arg2 : i32
    %c0_i32 = arith.constant 0 : i32
    %c0_i32_0 = arith.constant 0 : i32
    return %arg1, %1, %c0_i32 : i32, i32, i32
  }
  func.func @transform_2(%arg0: i32, %arg1: i32, %arg2: i32) -> (i32, i32, i32, i32) {
    %c0_i32 = arith.constant 0 : i32
    %c0_i32_0 = arith.constant 0 : i32
    %c0_i32_1 = arith.constant 0 : i32
    return %arg0, %arg1, %c0_i32, %c0_i32_0 : i32, i32, i32, i32
  }
}

</mosaic_0001>

<bundles_post_ra>
// kernel: tpu_custom_call.1
= control target key start
LH: loop header
LB: loop body
LE: loop exit
PB: predicated region body
PF: predicated region fallthrough
CT: control target
= control target key end

     0   :  { %7 = vsyncpa [#allocation4], 0  ;;  %s1006_s0 = inlined_call_operand.hbm [shape: f32[2,4,2,128], index: 0, kind: input, shape index: {}]   ;;  %s1007_s1 = inlined_call_operand.hbm [shape: s32[2,2,128], index: 1, kind: input, shape index: {}]   ;;  %s1008_s2 = inlined_call_operand.hbm [shape: f32[1,2,4,4], index: 2, kind: output, shape index: {}]  }
   0x1   :  { %9 = vsyncpa [#allocation4 + $0x1], 0 }
   0x2   :  { %10 = vsyncpa [#allocation7], 0 }
   0x3   :  { %12 = vsyncpa [#allocation7 + $0x1], 0 }
   0x4   :  { %13 = vsyncpa [#allocation5], 0 }
   0x5   :  { %15 = vsyncpa [#allocation5 + $0x1], 0  ;;  %s780_s9 = smov 0   ;;  %s782_s10 = smov 0  }
   0x6   :  { %s784_s11 = smov 0   ;;  %s786_s12 = smov 0  }
   0x7   :  { %s788_s13 = smov 0   ;;  %s790_s14 = smov 0  }
   0x8 LB: > { %s504_s15 = sadd.s32 4294967295, %s757_s14   ;;  %s505_s16 = sadd.s32 4294967294, %s757_s14   ;;  %s757_s14 = sphi %s790_s14, %s21_s14   ;;  %s753_s13 = sphi %s788_s13, %s1027_s13   ;;  %s749_s12 = sphi %s786_s12, %s1026_s12   ;;  %s745_s11 = sphi %s784_s11, %s1025_s11   ;;  %s741_s10 = sphi %s782_s10, %s1024_s10   ;;  %s737_s9 = sphi %s780_s9, %s1023_s9  }
   0x9   : > { %s36_s17 = sadd.s32 1, %s753_s13  ;;  %s51_s18 = sadd.s32 1, %s745_s11 }
   0xa   : > { %p38_p0 = scmp.ge.s32.totalorder %s36_s17, 2  ;;  %p58_p1 = scmp.ne.s32.totalorder %s745_s11, %s741_s10 }
   0xb   : > { %p59_p2 = scmp.eq.s32.totalorder %s757_s14, 0  ;;  %p64_p3 = scmp.ne.s32.totalorder %s741_s10, %s737_s9 }
   0xc   : > { %s1029_s17 = smov (%p38_p0, %s36_s17), 0  ;;  %p65_p5 = scmp.eq.s32.totalorder %s504_s15, 0 }
   0xd   : > { %p821_p4 = por %p59_p2, %p58_p1  ;;  %s46_s20 = ssub.s32 %s753_s13, %s1029_s17 }
   0xe   : > { %p120_p6 = scmp.eq.s32.totalorder %s504_s15, 1  ;;  %p49_p7 = scmp.eq.s32.totalorder %s46_s20, 0 }
   0xf   : > { %p827_p8 = por %p65_p5, %p64_p3  ;;  %p126_p10 = scmp.eq.s32.totalorder %s505_s16, 1 }
  0x10   : > { %p831_p9 = por %p120_p6, %p58_p1  ;;  %p542_p13 = scmp.lt.s32.totalorder %s757_s14, 2 }
  0x11   : > { %s1012_s21 = scalar_select %p827_p8, 1, 0 }
  0x12   : > { %s1013_s22 = scalar_select %p831_p9, 1, 0 }
  0x13   : > { %s836_s23 = scalar_select %p49_p7, %s745_s11, %s51_s18  }
  0x14   : > { %p838_p11 = por %p126_p10, %p64_p3  ;;  %s845_s25 = sand.u32 1, %s745_s11  }
  0x15   : > { %s508_s26 = sshll.u32 %s845_s25, 3  ;;  %s524_s27 = sshll.u32 %s753_s13, 7 }
  0x16   : > { %s1014_s24 = scalar_select %p838_p11, 1, 0 }
  0x17   : > { %s852_s30 = scalar_lea.hbm %s1006_s0, %s524_s27  ;;  %s150_s3 = scalar_lea.vmem [#allocation3], %s508_s26 }
  0x18   : > { %s159_s4 = sshll.u32 %s150_s3, 4  ;;  %p858_p0 = pnand %p542_p13, %p821_p4  ;;  %s854_s4 = int_to_ptr.vmem [resolvable:$true] %s159_s4 }
  0x19   : > { %s147_s6 = scalar_lea.sflag [#allocation4], %s845_s25  ;;  %s611_s7 = scalar_lea.hbm %s852_s30, 128 }
  0x1a   : > { %p612_p2 = scmp.ne.s32.totalorder %s852_s30, %s611_s7  ;;  %p613_p3 = pneg %p858_p0 }
  0x1b   : > { %s616_s16 = scalar_lea.hbm %s1006_s0, 256  ;;  %p617_p4 = scmp.lt.u32.totalorder %s852_s30, %s1006_s0 }
  0x1c   : > { %p614_p5 = pnand %p613_p3, %p612_p2  ;;  %p618_p7 = scmp.lt.u32.totalorder %s616_s16, %s611_s7 }
  0x1d   : > { %p620_p13 = scmp.lt.u32.totalorder %s611_s7, %s852_s30 }
  0x1e   : > { %p615_p6 = pneg %p614_p5  ;;  %p619_p10 = por %p618_p7, %p617_p4 }
  0x20   : > { %p621_p12 = por %p620_p13, %p619_p10 }
  0x22   : > { %p622_p1 = pnand %p621_p12, %p615_p6 }
  0x24   : > { %625 = shalt.err (!%p622_p1)
}
  0x25   : > { %s626_s20 = scalar_lea.vmem %s854_s4, 128  ;;  %s759_s26 = smov [#allocation3]  }
  0x26   : > { %p627_p2 = scmp.ne.s32.totalorder %s854_s4, %s626_s20  ;;  %s631_s27 = sshll.u32 %s759_s26, 4  ;;  %s632_s27 = int_to_ptr.vmem [resolvable:$false] %s631_s27 }
  0x27   : > { %s633_s28 = scalar_lea.vmem %s632_s27, 256  ;;  %p634_p9 = scmp.lt.s32.totalorder %s854_s4, %s632_s27 }
  0x28   : > { %p629_p5 = pnand %p627_p2, %p613_p3  ;;  %p635_p4 = scmp.lt.s32.totalorder %s633_s28, %s626_s20 }
  0x2a   : > { %p630_p11 = pneg %p629_p5  ;;  %p636_p7 = por %p635_p4, %p634_p9 }
  0x2c   : > { %p637_p10 = pnand %p636_p7, %p630_p11 }
  0x2e   : > { %640 = shalt.err (!%p637_p10)
}
  0x2f   : > { %s760_s29 = smov 32   ;;  %s761_s3 = smov 2  }
  0x30   : > { %534 = dma.hbm_to_vmem [thread:$0]  (!%p858_p0), %s852_s30, 128, %s854_s4, %s147_s6, %s760_s29, %s760_s29, %s761_s3  }
  0x31   : > { %p187_p12 = scmp.lt.s32.totalorder %s757_s14, 3  ;;  %s511_s7 = sshll.u32 %s845_s25, 1 }
  0x32   : > { %s512_s8 = sshll.u32 %s753_s13, 5  ;;  %p1016_p9 = scmp.ge.s32.totalorder %s757_s14, 1 }
  0x33   : > { %s903_s19 = scalar_lea.hbm %s1007_s1, %s512_s8  ;;  %s173_s20 = scalar_lea.vmem [#allocation6], %s511_s7 }
  0x34   : > { %p896_p11 = pnand %p1016_p9, %p187_p12  ;;  %s182_s26 = sshll.u32 %s173_s20, 4  ;;  %s183_s26 = int_to_ptr.vmem [resolvable:$true] %s182_s26 }
  0x35   : > { %s170_s30 = scalar_lea.sflag [#allocation7], %s845_s25  ;;  %s641_s4 = scalar_lea.hbm %s903_s19, 32 }
  0x36   : > { %s1017_s15 = scalar_select %p896_p11, 1, 0 }
  0x37   : > { %p642_p1 = scmp.ne.s32.totalorder %s903_s19, %s641_s4  ;;  %s646_s28 = scalar_lea.hbm %s1007_s1, 64 }
  0x38   : > { %p647_p2 = scmp.lt.u32.totalorder %s903_s19, %s1007_s1  ;;  %p648_p5 = scmp.lt.u32.totalorder %s646_s28, %s641_s4 }
  0x39   : > { %p644_p6 = pnand %p642_p1, %p613_p3  ;;  %p650_p7 = scmp.lt.u32.totalorder %s641_s4, %s903_s19 }
  0x3a   : > { %p649_p4 = por %p648_p5, %p647_p2 }
  0x3b   : > { %p645_p13 = pneg %p644_p6 }
  0x3c   : > { %p651_p10 = por %p650_p7, %p649_p4 }
  0x3e   : > { %p652_p12 = pnand %p651_p10, %p645_p13 }
  0x40   : > { %655 = shalt.err (!%p652_p12)
}
  0x41   : > { %s656_s25 = scalar_lea.vmem %s183_s26, 32  ;;  %s762_s7 = smov [#allocation6]  }
  0x42   : > { %p657_p9 = scmp.ne.s32.totalorder %s183_s26, %s656_s25  ;;  %s661_s8 = sshll.u32 %s762_s7, 4  ;;  %s662_s8 = int_to_ptr.vmem [resolvable:$false] %s661_s8 }
  0x43   : > { %s663_s16 = scalar_lea.vmem %s662_s8, 64  ;;  %p664_p8 = scmp.lt.s32.totalorder %s183_s26, %s662_s8 }
  0x44   : > { %p659_p1 = pnand %p657_p9, %p613_p3  ;;  %p665_p11 = scmp.lt.s32.totalorder %s663_s16, %s656_s25 }
  0x46   : > { %p660_p6 = pneg %p659_p1  ;;  %p666_p2 = por %p665_p11, %p664_p8 }
  0x48   : > { %p667_p5 = pnand %p666_p2, %p660_p6 }
  0x4a   : > { %670 = shalt.err (!%p667_p5)
}
  0x4b   : > { %537 = dma.hbm_to_vmem [thread:$0]  (!%p858_p0), %s903_s19, 32, %s183_s26, %s170_s30  }
  0x4c   : > { %p1018_p13 = scmp.ne.s32.totalorder %s1017_s15, 0 }
  0x4d   : > { %s928_s18 = sand.u32 (!%p1018_p13), 1, %s741_s10   ;;  %p1019_p3 = scmp.ne.s32.totalorder (!%p1018_p13), %s1012_s21, 0 }
  0x4e   : > { %191 = sbr.rel (%p1018_p13) target bundleno = 449 (0x1c1), region = 28  ;;  %s514_s20 = sshll.u32 (!%p1018_p13), %s928_s18, 3 }
  0x4f   : > { %s194_s4 = scalar_lea.sflag (!%p1018_p13), [#allocation4], %s928_s18  ;;  %s197_s6 = scalar_lea.vmem (!%p1018_p13), [#allocation3], %s514_s20 }
  0x55   : > { %724 = dma.done.wait (%p1019_p3), %s194_s4, 128  }
  0x56   : > { %726 = vsyncadd (%p1019_p3), %s194_s4, 4294967168  ;;  %s515_s5 = sshll.u32 %s928_s18, 1  ;;  %s203_s15 = scalar_lea.sflag [#allocation7], %s928_s18 }
  0x57   : > { %s938_s19 = scalar_lea.vmem [#allocation6], %s515_s5 }
  0x58   : > { %728 = dma.done.wait (%p1019_p3), %s203_s15, 32  }
  0x59   : > { %730 = vsyncadd (%p1019_p3), %s203_s15, 4294967264  ;;  %v763_v0 = vmov 0.0   ;;  %v243_v1 = vld [vmem:[%s197_s6] sm:$0x3]  ;;  %v518_v2 = vld [vmem:[%s197_s6 + $0x4] sm:$0x3] }
  0x5a   : > { %238 = vst [vmem:[#allocation2] sm:$0xff] %v763_v0  ;;  %239 = vst [vmem:[#allocation2 + $0x8] sm:$0xff] %v763_v0  ;;  %v245_v3 = vand.u32 2147483647, %v243_v1  ;;  %v284_v4 = vand.u32 2147483647, %v518_v2 }
  0x5b   : > { %240 = vst [vmem:[#allocation2 + $0x10] sm:$0xff] %v763_v0  ;;  %241 = vst [vmem:[#allocation2 + $0x18] sm:$0xff] %v763_v0  ;;  %v517_v7 = vld [vmem:[%s197_s6 + $0x2] sm:$0x3]  ;;  %v519_v11 = vld [vmem:[%s197_s6 + $0x6] sm:$0x3] }
  0x5c   : > { %v246_v5 = vsub.f32 0.0, %v245_v3  ;;  %v285_v6 = vsub.f32 0.0, %v284_v4  ;;  %v264_v9 = vand.u32 2147483647, %v517_v7  ;;  %v304_v13 = vand.u32 2147483647, %v519_v11 }
  0x5d   : > { %v250_v25 = vsub.f32 0.0, %v243_v1  ;;  %v242_v26 = vld [vmem:[%s938_s19] sm:$0x3]  ;;  %v289_v27 = vsub.f32 0.0, %v518_v2  ;;  %v269_v29 = vsub.f32 0.0, %v517_v7  ;;  %v309_v34 = vsub.f32 0.0, %v519_v11 }
  0x5e   : > { %v247_v8 = vmul.f32 1.442695, %v246_v5  ;;  %v286_v10 = vmul.f32 1.442695, %v285_v6  ;;  %v265_v12 = vsub.f32 0.0, %v264_v9  ;;  %v305_v15 = vsub.f32 0.0, %v304_v13 }
  0x5f   : > { %vm244_vm0 = vcmp.eq.s32.totalorder %v242_v26, 1  ;;  %v251_v28 = vmax.f32 %v250_v25, 0.0  ;;  %vm283_vm1 = vcmp.eq.s32.totalorder %v242_v26, 3  ;;  %v290_v31 = vmax.f32 %v289_v27, 0.0  ;;  %s516_s21 = sshll.u32 %s928_s18, 2  ;;  %s521_s26 = sshll.u32 %s749_s12, 6 }
  0x60   : > { %595 = vpow2.f32 %v247_v8  ;;  %v266_v14 = vmul.f32 1.442695, %v265_v12  ;;  %v306_v16 = vmul.f32 1.442695, %v305_v15  ;;  %v255_v35 = vsel %vm244_vm0, 0.0, %v243_v1  ;;  %s231_s30 = scalar_lea.vmem [#allocation8], %s516_s21  ;;  %s955_s3 = scalar_lea.hbm %s1008_s2, %s521_s26 }
  0x61   : > { %597 = vpow2.f32 %v286_v10  ;;  %v294_v38 = vsel %vm283_vm1, 0.0, %v518_v2  ;;  %vm263_vm2 = vcmp.eq.s32.totalorder %v242_v26, 2  ;;  %v270_v39 = vmax.f32 %v269_v29, 0.0  ;;  %v258_v46 = vld [vmem:[#allocation2] sm:$0x3]  ;;  %s393_s27 = sshll.u32 %s231_s30, 4  ;;  %s957_s27 = int_to_ptr.vmem [resolvable:$true] %s393_s27 }
  0x62   : > { %599 = vpow2.f32 %v266_v14  ;;  %vm303_vm3 = vcmp.eq.s32.totalorder %v242_v26, 4  ;;  %v310_v44 = vmax.f32 %v309_v34, 0.0  ;;  %v274_v48 = vsel %vm263_vm2, 0.0, %v517_v7  ;;  %v298_v50 = vld [vmem:[#allocation2 + $0x10] sm:$0x3]  ;;  %s378_s12 = scalar_lea.sflag [#allocation5], %s928_s18 }
  0x63   : > { %601 = vpow2.f32 %v306_v16  ;;  %v314_v54 = vsel %vm303_vm3, 0.0, %v519_v11  ;;  %v278_v59 = vld [vmem:[#allocation2 + $0x8] sm:$0x3]  ;;  %v318_v62 = vld [vmem:[#allocation2 + $0x18] sm:$0x3]  ;;  %v340_v7 = vlaneseq  ;;  %vm358_vm4 = vcmask 1041409  }
  0x64   : > { %vm360_vm5 = vcmask 1042434   ;;  %vm362_vm6 = vcmask 1043459   ;;  %vm365_vm7 = vcmask 60416   ;;  %vm369_vm8 = vcmask 3072   ;;  %s671_s25 = scalar_lea.vmem %s957_s27, 64  ;;  %p1020_p0 = scmp.ne.s32.totalorder %s1013_s22, 0 }
  0x65   : > { %v341_v8 = vand.u32 127, %v340_v7  ;;  %v343_v9 = vshrl.u32 %v340_v7, 7  ;;  %vm371_vm9 = vcmask 11272   ;;  %vm373_vm10 = vcmask 19472   ;;  %p672_p8 = scmp.ne.s32.totalorder %s957_s27, %s671_s25  ;;  %s764_s7 = smov [#allocation8]  }
  0x66   : > { %vm375_vm11 = vcmask 27672   ;;  %s675_s8 = sshll.u32 %s764_s7, 4  ;;  %s676_s8 = int_to_ptr.vmem [resolvable:$false] %s675_s8 }
  0x67   : > { %v344_v11 = vsub.s32 %v341_v8, %v343_v9  ;;  %p673_p11 = pnand %p672_p8, %p1020_p0  ;;  %s677_s16 = scalar_lea.vmem %s676_s8, 128 }
  0x68   : > { %p678_p7 = scmp.lt.s32.totalorder %s957_s27, %s676_s8  ;;  %p679_p10 = scmp.lt.s32.totalorder %s677_s16, %s671_s25 }
  0x69   : > { %p674_p4 = pneg %p673_p11 }
  0x6a   : > { %v596_v17 = vpop.eup %595  ;;  %p680_p12 = por %p679_p10, %p678_p7 }
  0x6b   : > { %v598_v18 = vpop.eup %597  ;;  %v249_v19 = vadd.f32 1.0, %v596_v17 }
  0x6c   : > { %v288_v20 = vadd.f32 1.0, %v598_v18  ;;  %v600_v21 = vpop.eup %599  ;;  %p681_p9 = pnand %p680_p12, %p674_p4 }
  0x6d   : > { %603 = vlog2.f32 %v249_v19  ;;  %v268_v22 = vadd.f32 1.0, %v600_v21  ;;  %v602_v23 = vpop.eup %601 }
  0x6e   : > { %605 = vlog2.f32 %v288_v20  ;;  %v308_v24 = vadd.f32 1.0, %v602_v23 }
  0x6f   : > { %607 = vlog2.f32 %v268_v22 }
  0x70   : > { %609 = vlog2.f32 %v308_v24 }
  0x77   : > { %v604_v30 = vpop.eup %603 }
  0x78   : > { %v606_v32 = vpop.eup %605  ;;  %v253_v33 = vmul.f32 0.6931472, %v604_v30 }
  0x79   : > { %v292_v36 = vmul.f32 0.6931472, %v606_v32  ;;  %v608_v40 = vpop.eup %607 }
  0x7a   : > { %v254_v37 = vadd.f32 %v253_v33, %v251_v28  ;;  %v272_v43 = vmul.f32 0.6931472, %v608_v40  ;;  %v610_v45 = vpop.eup %609 }
  0x7b   : > { %v293_v41 = vadd.f32 %v292_v36, %v290_v31  ;;  %v312_v52 = vmul.f32 0.6931472, %v610_v45 }
  0x7c   : > { %v256_v42 = vadd.f32 %v255_v35, %v254_v37  ;;  %v273_v51 = vadd.f32 %v272_v43, %v270_v39 }
  0x7d   : > { %v295_v47 = vadd.f32 %v294_v38, %v293_v41  ;;  %v313_v57 = vadd.f32 %v312_v52, %v310_v44 }
  0x7e   : > { %v257_v49 = vmin.f32 %v256_v42, 100.0  ;;  %v275_v56 = vadd.f32 %v274_v48, %v273_v51 }
  0x7f   : > { %v296_v53 = vmin.f32 %v295_v47, 100.0  ;;  %v315_v61 = vadd.f32 %v314_v54, %v313_v57 }
  0x80   : > { %v259_v55 = vadd.f32 %v258_v46, %v257_v49  ;;  %v276_v60 = vmin.f32 %v275_v56, 100.0 }
  0x81   : > { %v299_v58 = vadd.f32 %v298_v50, %v296_v53  ;;  %v316_v1 = vmin.f32 %v315_v61, 100.0 }
  0x82   : > { %260 = vst [vmem:[#allocation2] sm:$0x3] %v259_v55  ;;  %v279_v63 = vadd.f32 %v278_v59, %v276_v60 }
  0x83   : > { %300 = vst [vmem:[#allocation2 + $0x10] sm:$0x3] %v299_v58  ;;  %v319_v2 = vadd.f32 %v318_v62, %v316_v1 }
  0x84   : > { %280 = vst [vmem:[#allocation2 + $0x8] sm:$0x3] %v279_v63 }
  0x85   : > { %320 = vst [vmem:[#allocation2 + $0x18] sm:$0x3] %v319_v2 }
  0x89   : > { %v324_v3 = vld [vmem:[#allocation2] sm:$0xff] }
  0x8a   : > { %328 = vadd.xlane.f32.xlu0 %v324_v3  ;;  %v326_v4 = vld [vmem:[#allocation2 + $0x10] sm:$0xff] }
  0x8b   : > { %332 = vadd.xlane.f32.xlu1 %v326_v4  ;;  %v325_v5 = vld [vmem:[#allocation2 + $0x8] sm:$0xff] }
  0x8c   : > { %v327_v6 = vld [vmem:[#allocation2 + $0x18] sm:$0xff] }
  0x8e   : > { %330 = vadd.xlane.f32.xlu0 %v325_v5 }
  0x8f   : > { %334 = vadd.xlane.f32.xlu1 %v327_v6 }
 0x117   : > { %v329_v10 = vpop.xlane.xlu0 %328 }
 0x118   : > { %v333_v12 = vpop.xlane.xlu1 %332  ;;  %v345_v14 = vrot.slane %v329_v10, %v344_v11 }
 0x119   : > { %v353_v16 = vrot.slane %v333_v12, %v344_v11 }
 0x11b   : > { %v331_v13 = vpop.xlane.xlu0 %330 }
 0x11c   : > { %v349_v15 = vrot.slane %v331_v13, %v344_v11  ;;  %v335_v17 = vpop.xlane.xlu1 %334 }
 0x11d   : > { %v357_v19 = vrot.slane %v335_v17, %v344_v11 }
 0x11e   : > { %v359_v18 = vsel %vm358_vm4, %v349_v15, %v345_v14 }
 0x11f   : > { %v361_v20 = vsel %vm360_vm5, %v353_v16, %v359_v18 }
 0x120   : > { %v363_v21 = vsel %vm362_vm6, %v357_v19, %v361_v20 }
 0x121   : > { %v366_v22 = vsel %vm365_vm7, %v363_v21, 0.0 }
 0x122   : > { %367 = vadd.xlane.f32.xlu0 %v366_v22 }
 0x1af   : > { %v368_v23 = vpop.xlane.xlu0 %367 }
 0x1b0   : > { %370 = vst.msk [vmem:[%s231_s30] sm:$0xf] %vm369_vm8, %v368_v23 }
 0x1b1   : > { %372 = vst.msk [vmem:[%s231_s30] sm:$0xf] %vm371_vm9, %v763_v0 }
 0x1b2   : > { %374 = vst.msk [vmem:[%s231_s30] sm:$0xf] %vm373_vm10, %v763_v0 }
 0x1b3   : > { %376 = vst.msk [vmem:[%s231_s30] sm:$0xf] %vm375_vm11, %v763_v0 }
 0x1b4   : > { %684 = shalt.err (!%p681_p9)
}
 0x1b5   : > { %s685_s18 = scalar_lea.hbm %s955_s3, 64  ;;  %s689_s6 = scalar_lea.hbm %s1008_s2, 128 }
 0x1b6   : > { %p686_p1 = scmp.ne.s32.totalorder %s955_s3, %s685_s18  ;;  %p690_p5 = scmp.lt.u32.totalorder %s955_s3, %s1008_s2 }
 0x1b7   : > { %p691_p13 = scmp.lt.u32.totalorder %s689_s6, %s685_s18  ;;  %p693_p8 = scmp.lt.u32.totalorder %s685_s18, %s955_s3 }
 0x1b8   : > { %p687_p6 = pnand %p686_p1, %p1020_p0 }
 0x1b9   : > { %p692_p3 = por %p691_p13, %p690_p5 }
 0x1ba   : > { %p688_p2 = pneg %p687_p6 }
 0x1bb   : > { %p694_p11 = por %p693_p8, %p692_p3 }
 0x1bd   : > { %p695_p4 = pnand %p694_p11, %p688_p2 }
 0x1bf   : > { %698 = shalt.err (!%p695_p4)
}
 0x1c0   : > { %529 = dma.vmem_to_hbm [thread:$0]  (%p1020_p0), %s957_s27, 64, %s955_s3, %s378_s12  }
 0x1c1 PF: > { %s405_s19 = sand.u32 1, %s737_s9   ;;  %p1021_p7 = scmp.ne.s32.totalorder %s1014_s24, 0 }
 0x1c2   : > { %p1022_p10 = scmp.ge.s32.totalorder %s757_s14, 2  ;;  %s406_s21 = scalar_lea.sflag [#allocation5], %s405_s19 }
 0x1c4   : > { %p539_p12 = pnand %p1022_p10, %p1021_p7 }
 0x1c6   : > { %732 = dma.done.wait (!%p539_p12), %s406_s21, 64  }
 0x1c7   : > { %734 = vsyncadd (!%p539_p12), %s406_s21, 4294967232  ;;  %s21_s14 = sadd.s32 1, %s757_s14   ;;  %s1023_s9 = smov %s741_s10 }
 0x1c8   : > { %p18_p9 = scmp.ge.s32.totalorder %s21_s14, 4   ;;  %s1024_s10 = smov %s745_s11 }
 0x1c9   : > { %s1025_s11 = smov %s836_s23  ;;  %s1026_s12 = smov %s753_s13 }
 0x1ca   : > { %s1027_s13 = smov %s1029_s17  ;;  %20 = sbr.rel (!%p18_p9) target bundleno = 8 (0x8), region = 100 }
 0x1d1   :  { %411 = vsyncpa [#allocation4], 1 }
 0x1d2   :  { %413 = vsyncpa [#allocation4 + $0x1], 1 }
 0x1d3   :  { %414 = vsyncpa [#allocation7], 1 }
 0x1d4   :  { %416 = vsyncpa [#allocation7 + $0x1], 1 }
 0x1d5   :  { %417 = vsyncpa [#allocation5], 1 }
 0x1d6   :  { %419 = vsyncpa [#allocation5 + $0x1], 1 }

</bundles_post_ra>
